<compile_context>
chip_gen: v5e
topology: v5e:2x2
jax: 0.10.0
libtpu: 0.0.40
codegen_flags: <defaults>
</compile_context>

<pallas_src>
import numpy as np
import jax
import jax.numpy as jnp
from jax.experimental import pallas as pl
from jax.experimental.pallas import tpu as pltpu

NODE_TILE = 128   # nodes per adjacency tile (MXU M/K dim)
LANE = 128        # padded feature / hidden lane width


# ----------------------------- Pallas kernel --------------------------------
def _make_gcn_kernel(t_sub, gpt):
    """Kernel processing t_sub 128-node tiles (t_sub*gpt graphs) per grid step."""

    def kernel(x_ref, a_ref, p_ref, w_ref, b_ref, out_ref):
        # Packed weights (bf16): rows [0:128)=W1(pad), [128:256)=Wlin(pad), [256:384)=W23(pad).
        w1 = w_ref[0:LANE, :]
        wl = w_ref[LANE:2 * LANE, :]
        w23 = w_ref[2 * LANE:3 * LANE, :]
        # Packed biases (f32): row 0=b1, row 1=blin, row 2=b23 (rest zero padding).
        b1 = b_ref[0:1, :]
        bl = b_ref[1:2, :]
        b23 = b_ref[2:3, :]

        # GCNConv linear part: one big matmul, M = t_sub*128 (amortizes MXU weight
        # loads / result drains on the 256-wide v6e/v7x arrays).
        xw = jnp.dot(x_ref[...], w1, preferred_element_type=jnp.float32)
        xw_b = xw.astype(jnp.bfloat16)

        # Block-diagonal aggregation: per 128-node tile, h_t = A_hat_t @ (XW)_t.
        # Reshapes only split the leading (sublane-major) dim -> no relayout.
        a3 = a_ref[...].reshape(t_sub, NODE_TILE, NODE_TILE)
        xw3 = xw_b.reshape(t_sub, NODE_TILE, LANE)
        h = jnp.einsum("tij,tjd->tid", a3, xw3,
                       preferred_element_type=jnp.float32)
        h = h.reshape(t_sub * NODE_TILE, LANE)
        # Bias added after aggregation (as in PyG GCNConv), then ReLU.
        h = jnp.maximum(h + b1, 0.0)

        # global_mean_pool: block-diagonal pooling (gpt graphs per 128-node tile).
        p3 = p_ref[...].reshape(t_sub, gpt, NODE_TILE)
        h3 = h.astype(jnp.bfloat16).reshape(t_sub, NODE_TILE, LANE)
        pooled = jnp.einsum("tgn,tnd->tgd", p3, h3,
                            preferred_element_type=jnp.float32)
        pooled = pooled.reshape(t_sub * gpt, LANE)

        # dropout(p=0.2) -> identity in eval mode.

        # lin (64->64, padded), LeakyReLU(0.01), folded head (64->2, padded).
        # Head runs once per step with M = t_sub*gpt (>= 8*t_sub), not per tile.
        z = jnp.dot(pooled.astype(jnp.bfloat16), wl,
                    preferred_element_type=jnp.float32) + bl
        z = jnp.where(z > 0, z, 0.01 * z)
        z = jnp.dot(z.astype(jnp.bfloat16), w23,
                    preferred_element_type=jnp.float32) + b23

        out_ref[...] = z.astype(out_ref.dtype)

    return kernel


def gcn_forward_pallas(x_pad, a_blk, p_blk, w_pack, b_pack, num_graphs, t_sub):
    """x_pad: (T*128, 128) bf16 node features; a_blk: (T*128, 128) bf16 block-diag
    A_hat tiles; p_blk: (T*gpt, 128) bf16 pooling tiles; w_pack: (384, 128) bf16;
    b_pack: (8, 128) f32; t_sub: node tiles processed per grid step."""
    num_tiles = a_blk.shape[0] // NODE_TILE
    assert num_tiles % t_sub == 0
    num_steps = num_tiles // t_sub
    gpt = p_blk.shape[0] // num_tiles

    # Advisory cost estimate for XLA scheduling around the custom call.
    flops = num_tiles * (2 * NODE_TILE * LANE * LANE        # X@W1
                         + 2 * NODE_TILE * NODE_TILE * LANE  # A@XW
                         + 2 * gpt * NODE_TILE * LANE        # pooling
                         + 4 * gpt * LANE * LANE)            # lin + folded head
    bytes_accessed = ((x_pad.size + a_blk.size + p_blk.size + w_pack.size) * 2
                      + b_pack.size * 4 + num_tiles * gpt * LANE * 4)

    out_padded = pl.pallas_call(
        _make_gcn_kernel(t_sub, gpt),
        out_shape=jax.ShapeDtypeStruct((num_tiles * gpt, LANE), jnp.float32),
        grid_spec=pltpu.PrefetchScalarGridSpec(
            num_scalar_prefetch=0,
            grid=(num_steps,),
            in_specs=[
                pl.BlockSpec((t_sub * NODE_TILE, LANE), lambda i: (i, 0)),       # features
                pl.BlockSpec((t_sub * NODE_TILE, NODE_TILE), lambda i: (i, 0)),  # A_hat tiles
                pl.BlockSpec((t_sub * gpt, NODE_TILE), lambda i: (i, 0)),        # pooling tiles
                pl.BlockSpec((3 * LANE, LANE), lambda i: (0, 0)),                # packed weights
                pl.BlockSpec((8, LANE), lambda i: (0, 0)),                       # packed biases
            ],
            out_specs=pl.BlockSpec((t_sub * gpt, LANE), lambda i: (i, 0)),
        ),
        compiler_params=pltpu.CompilerParams(
            dimension_semantics=("parallel",),          # independent tile groups (megacore)
            vmem_limit_bytes=32 * 1024 * 1024,          # portable across v5e/v6e/v7x
        ),
        cost_estimate=pl.CostEstimate(flops=flops, transcendentals=0,
                                      bytes_accessed=bytes_accessed),
    )(x_pad, a_blk, p_blk, w_pack, b_pack)

    # Lane-dense padded slab -> (num_graphs, 2) logits.
    return out_padded[:num_graphs, :2]


# ------------------------------- host-side glue -------------------------------
def build_gcn_norm_adj(edge_index, num_nodes):
    """Dense symmetric-normalized adjacency matching PyG gcn_norm with
    add_remaining_self_loops: existing self-loops are replaced by a single
    unit-weight self-loop per node."""
    src = np.asarray(edge_index[0])
    dst = np.asarray(edge_index[1])
    keep = src != dst
    src, dst = src[keep], dst[keep]
    loop = np.arange(num_nodes, dtype=src.dtype)
    src = np.concatenate([src, loop])
    dst = np.concatenate([dst, loop])
    w = np.ones(src.shape[0], np.float32)
    deg = np.zeros(num_nodes, np.float32)
    np.add.at(deg, dst, w)
    dinv = np.where(deg > 0, 1.0 / np.sqrt(deg), 0.0).astype(np.float32)
    norm = dinv[src] * dinv[dst]
    # Row i of A_hat aggregates messages from source nodes j into target i.
    A = np.zeros((num_nodes, num_nodes), np.float32)
    np.add.at(A, (dst, src), norm)
    return A


def pack_graphs(x_list, a_list, max_tiles_per_step=32, min_grid_steps=4):
    """Pack fixed-size graphs into 128-node tiles (block-diagonal adjacency blocks),
    pre-cast to bf16 once, and choose how many tiles each grid step processes."""
    nodes_per_graph = x_list[0].shape[0]
    feat = x_list[0].shape[1]
    assert NODE_TILE % nodes_per_graph == 0
    gpt = NODE_TILE // nodes_per_graph
    assert gpt % 8 == 0, "need sublane-aligned pooling/output tiles"

    num_graphs = len(x_list)
    num_tiles = -(-num_graphs // gpt)
    # Big per-step blocks amortize pipeline overhead; keep >= min_grid_steps steps so
    # v7x's two TensorCores both get work; cap block size for 32 MiB scoped VMEM.
    t_sub = max(1, min(max_tiles_per_step, -(-num_tiles // min_grid_steps)))
    num_steps = -(-num_tiles // t_sub)
    num_tiles_pad = num_steps * t_sub
    graphs_pad = num_tiles_pad * gpt

    x_pad = np.zeros((num_tiles_pad * NODE_TILE, LANE), np.float32)
    a_blk = np.zeros((num_tiles_pad * NODE_TILE, NODE_TILE), np.float32)
    p_blk = np.zeros((graphs_pad, NODE_TILE), np.float32)

    for g in range(num_graphs):
        tile, g_local = divmod(g, gpt)
        r0 = g * nodes_per_graph                  # global node row
        c0 = g_local * nodes_per_graph            # column within the tile
        x_pad[r0:r0 + nodes_per_graph, :feat] = np.asarray(x_list[g])
        a_blk[tile * NODE_TILE + c0:tile * NODE_TILE + c0 + nodes_per_graph,
              c0:c0 + nodes_per_graph] = np.asarray(a_list[g])
        p_blk[g, c0:c0 + nodes_per_graph] = 1.0 / nodes_per_graph

    # Pre-cast to bf16 ONCE here (kernel MXU operands) instead of per forward pass.
    return (jnp.asarray(x_pad, jnp.bfloat16),
            jnp.asarray(a_blk, jnp.bfloat16),
            jnp.asarray(p_blk, jnp.bfloat16),
            t_sub)


def pack_params(params):
    """Pad + concatenate weights into one bf16 slab; fold the two tail linears."""
    w1, b1 = params["w1"], params["b1"]   # (96, 64), (1, 64)
    wl, bl = params["wl"], params["bl"]   # (64, 64), (1, 64)
    w2, b2 = params["w2"], params["b2"]   # (64, 32), (1, 32)
    w3, b3 = params["w3"], params["b3"]   # (32, 2),  (1, 2)

    # No nonlinearity between the two head linears -> fold on the host side.
    w23 = w2 @ w3                     # (64, 2)
    b23 = b2 @ w3 + b3                # (1, 2)

    def pad2(m, rows, cols):
        out = jnp.zeros((rows, cols), jnp.float32)
        return out.at[:m.shape[0], :m.shape[1]].set(m)

    w_pack = jnp.concatenate([
        pad2(w1, LANE, LANE),          # rows   0:128  (feature 96 -> 128 pad)
        pad2(wl, LANE, LANE),          # rows 128:256
        pad2(w23, LANE, LANE),         # rows 256:384
    ], axis=0).astype(jnp.bfloat16)

    b_pack = jnp.zeros((8, LANE), jnp.float32)
    b_pack = b_pack.at[0, :b1.shape[1]].set(b1[0])
    b_pack = b_pack.at[1, :bl.shape[1]].set(bl[0])
    b_pack = b_pack.at[2, :b23.shape[1]].set(b23[0])
    return w_pack, b_pack


def init_params(key, features_nodes=96, hidden_channels=64):
    k1, k2, k3, k4 = jax.random.split(key, 4)

    def linear_init(k, fan_in, fan_out):
        bound = 1.0 / jnp.sqrt(fan_in)
        kw, kb = jax.random.split(k)
        w = jax.random.uniform(kw, (fan_in, fan_out), jnp.float32, -bound, bound)
        b = jax.random.uniform(kb, (1, fan_out), jnp.float32, -bound, bound)
        return w, b

    w1, b1 = linear_init(k1, features_nodes, hidden_channels)   # GCNConv weight/bias
    wl, bl = linear_init(k2, hidden_channels, 64)                # self.lin
    w2, b2 = linear_init(k3, 64, 32)                             # pred Linear(64, 32)
    w3, b3 = linear_init(k4, 32, 2)                              # pred Linear(32, 2)
    return dict(w1=w1, b1=b1, wl=wl, bl=bl, w2=w2, b2=b2, w3=w3, b3=b3)


# ------------------------------- references -----------------------------------
def gcn_forward_reference_quant(x_pad, a_blk, p_blk, w_pack, b_pack, num_graphs):
    """Pure-JAX reference following the same bf16 quantization path as the kernel."""
    num_tiles = a_blk.shape[0] // NODE_TILE
    gpt = p_blk.shape[0] // num_tiles
    w1, wl, w23 = w_pack[0:LANE], w_pack[LANE:2 * LANE], w_pack[2 * LANE:3 * LANE]
    b1, bl, b23 = b_pack[0:1], b_pack[1:2], b_pack[2:3]
    outs = []
    for t in range(num_tiles):
        xt = x_pad[t * NODE_TILE:(t + 1) * NODE_TILE]
        at = a_blk[t * NODE_TILE:(t + 1) * NODE_TILE]
        pt = p_blk[t * gpt:(t + 1) * gpt]
        xw = jnp.dot(xt, w1, preferred_element_type=jnp.float32)
        h = jnp.dot(at, xw.astype(jnp.bfloat16), preferred_element_type=jnp.float32) + b1
        h = jnp.maximum(h, 0.0)
        pooled = jnp.dot(pt, h.astype(jnp.bfloat16), preferred_element_type=jnp.float32)
        z = jnp.dot(pooled.astype(jnp.bfloat16), wl, preferred_element_type=jnp.float32) + bl
        z = jnp.where(z > 0, z, 0.01 * z)
        z = jnp.dot(z.astype(jnp.bfloat16), w23, preferred_element_type=jnp.float32) + b23
        outs.append(z)
    return jnp.concatenate(outs, axis=0)[:num_graphs, :2]


def gcn_forward_reference_f32(x_list, a_list, params):
    """Full-precision reference of the original PyTorch module (eval mode)."""
    w1, b1 = params["w1"], params["b1"]
    wl, bl = params["wl"], params["bl"]
    w2, b2 = params["w2"], params["b2"]
    w3, b3 = params["w3"], params["b3"]
    outs = []
    for x, a in zip(x_list, a_list):
        x = jnp.asarray(x, jnp.float32)
        a = jnp.asarray(a, jnp.float32)
        h = jnp.maximum(a @ (x @ w1) + b1, 0.0)            # GCNConv + ReLU
        pooled = jnp.mean(h, axis=0, keepdims=True)        # global_mean_pool
        z = pooled @ wl + bl                               # lin (dropout = identity)
        z = jnp.where(z > 0, z, 0.01 * z)                  # LeakyReLU
        z = (z @ w2 + b2) @ w3 + b3                        # pred head
        outs.append(z)
    return jnp.concatenate(outs, axis=0)


# ---------------------------------- main --------------------------------------
if __name__ == "__main__":
    key = jax.random.PRNGKey(0)
    kx, ke, kp = jax.random.split(key, 3)

    num_graphs = 64          # 8 graphs per 128-node tile -> 8 tiles -> t_sub=2, grid=(4,)
    nodes_per_graph = 16
    features_nodes = 96
    edges_per_graph = 48

    xkeys = jax.random.split(kx, num_graphs)
    ekeys = jax.random.split(ke, num_graphs)
    x_list, a_list = [], []
    for g in range(num_graphs):
        x_list.append(np.asarray(jax.random.normal(
            xkeys[g], (nodes_per_graph, features_nodes), jnp.float32)))
        ei = np.asarray(jax.random.randint(
            ekeys[g], (2, edges_per_graph), 0, nodes_per_graph, jnp.int32))
        a_list.append(build_gcn_norm_adj(ei, nodes_per_graph))

    x_pad, a_blk, p_blk, t_sub = pack_graphs(x_list, a_list)
    params = init_params(kp, features_nodes=features_nodes, hidden_channels=64)
    w_pack, b_pack = pack_params(params)

    out = gcn_forward_pallas(x_pad, a_blk, p_blk, w_pack, b_pack, num_graphs, t_sub)
    out = jax.block_until_ready(out)
    assert out.shape == (num_graphs, 2), out.shape

    # Check against a reference with identical bf16 quantization (tight tolerance).
    ref_q = gcn_forward_reference_quant(x_pad, a_blk, p_blk, w_pack, b_pack, num_graphs)
    assert bool(jnp.allclose(out, ref_q, atol=2e-3, rtol=2e-3)), "mismatch vs bf16 reference"

    # Check against the full-precision original-model semantics (bf16 drift tolerance).
    ref_f32 = gcn_forward_reference_f32(x_list, a_list, params)
    assert bool(jnp.allclose(out, ref_f32, atol=5e-2, rtol=5e-2)), "mismatch vs f32 reference"

    print("KERNEL_OK")
</pallas_src>

<mosaic_0001>
module attributes {stable_mosaic.version = 11 : i64} {
  func.func @kernel(%arg0: i32, %arg1: memref<256x128xbf16, #tpu.memory_space<vmem>>, %arg2: memref<256x128xbf16, #tpu.memory_space<vmem>>, %arg3: memref<16x128xbf16, #tpu.memory_space<vmem>>, %arg4: memref<384x128xbf16, #tpu.memory_space<vmem>>, %arg5: memref<8x128xf32, #tpu.memory_space<vmem>>, %arg6: memref<16x128xf32, #tpu.memory_space<vmem>>) attributes {dimension_semantics = [#tpu.dimension_semantics<parallel>], iteration_bounds = array<i64: 4>, scalar_prefetch = 0 : i64, scratch_operands = 0 : i64, tpu.core_type = #tpu.core_type<tc>, window_params = [{transform_indices = @transform_0, window_bounds = array<i64: 256, 128>}, {transform_indices = @transform_1, window_bounds = array<i64: 256, 128>}, {transform_indices = @transform_2, window_bounds = array<i64: 16, 128>}, {pipeline_mode = #tpu.pipeline_mode<synchronous>, transform_indices = @transform_3, window_bounds = array<i64: 384, 128>}, {pipeline_mode = #tpu.pipeline_mode<synchronous>, transform_indices = @transform_4, window_bounds = array<i64: 8, 128>}, {transform_indices = @transform_5, window_bounds = array<i64: 16, 128>}]} {
    %c0 = arith.constant 0 : index
    %c0_0 = arith.constant 0 : index
    %0 = vector.load %arg4[%c0, %c0_0] : memref<384x128xbf16, #tpu.memory_space<vmem>>, vector<128x128xbf16>
    %c128 = arith.constant 128 : index
    %c0_1 = arith.constant 0 : index
    %1 = vector.load %arg4[%c128, %c0_1] : memref<384x128xbf16, #tpu.memory_space<vmem>>, vector<128x128xbf16>
    %c256 = arith.constant 256 : index
    %c0_2 = arith.constant 0 : index
    %2 = vector.load %arg4[%c256, %c0_2] : memref<384x128xbf16, #tpu.memory_space<vmem>>, vector<128x128xbf16>
    %c0_3 = arith.constant 0 : index
    %c0_4 = arith.constant 0 : index
    %3 = vector.load %arg5[%c0_3, %c0_4] : memref<8x128xf32, #tpu.memory_space<vmem>>, vector<1x128xf32>
    %c1 = arith.constant 1 : index
    %c0_5 = arith.constant 0 : index
    %4 = vector.load %arg5[%c1, %c0_5] : memref<8x128xf32, #tpu.memory_space<vmem>>, vector<1x128xf32>
    %c2 = arith.constant 2 : index
    %c0_6 = arith.constant 0 : index
    %5 = vector.load %arg5[%c2, %c0_6] : memref<8x128xf32, #tpu.memory_space<vmem>>, vector<1x128xf32>
    %c0_7 = arith.constant 0 : index
    %c0_8 = arith.constant 0 : index
    %6 = vector.load %arg1[%c0_7, %c0_8] : memref<256x128xbf16, #tpu.memory_space<vmem>>, vector<256x128xbf16>
    %cst = arith.constant dense<0.000000e+00> : vector<256x128xf32>
    %7 = tpu.matmul %6, %0, %cst {dimension_numbers = #tpu.dot_dimension_numbers<[1], [0], [0], [1], [0, 0, 1, 1], [], []>} : vector<256x128xbf16>, vector<128x128xbf16>, vector<256x128xf32> -> vector<256x128xf32>
    %8 = arith.truncf %7 : vector<256x128xf32> to vector<256x128xbf16>
    %c0_9 = arith.constant 0 : index
    %c0_10 = arith.constant 0 : index
    %9 = vector.load %arg2[%c0_9, %c0_10] : memref<256x128xbf16, #tpu.memory_space<vmem>>, vector<256x128xbf16>
    %10 = vector.shape_cast %9 : vector<256x128xbf16> to vector<2x128x128xbf16>
    %11 = vector.shape_cast %8 : vector<256x128xbf16> to vector<2x128x128xbf16>
    "tpu.trace_start"() <{level = 10 : i32, message = "tij,tjd->tid"}> : () -> ()
    %cst_11 = arith.constant dense<0.000000e+00> : vector<2x128x128xf32>
    %12 = tpu.matmul %10, %11, %cst_11 {dimension_numbers = #tpu.dot_dimension_numbers<[2], [1], [1], [2], [0, 0, 0, 1, 1, 2], [0], [0]>} : vector<2x128x128xbf16>, vector<2x128x128xbf16>, vector<2x128x128xf32> -> vector<2x128x128xf32>
    "tpu.trace_stop"() : () -> ()
    %13 = vector.shape_cast %12 : vector<2x128x128xf32> to vector<256x128xf32>
    %14 = vector.broadcast %3 : vector<1x128xf32> to vector<256x128xf32>
    %15 = arith.addf %13, %14 : vector<256x128xf32>
    %cst_12 = arith.constant 0.000000e+00 : f32
    %16 = vector.broadcast %cst_12 : f32 to vector<256x128xf32>
    %17 = arith.maximumf %15, %16 : vector<256x128xf32>
    %c0_13 = arith.constant 0 : index
    %c0_14 = arith.constant 0 : index
    %18 = vector.load %arg3[%c0_13, %c0_14] : memref<16x128xbf16, #tpu.memory_space<vmem>>, vector<16x128xbf16>
    %19 = vector.shape_cast %18 : vector<16x128xbf16> to vector<2x8x128xbf16>
    %20 = arith.truncf %17 : vector<256x128xf32> to vector<256x128xbf16>
    %21 = vector.shape_cast %20 : vector<256x128xbf16> to vector<2x128x128xbf16>
    "tpu.trace_start"() <{level = 10 : i32, message = "tgn,tnd->tgd"}> : () -> ()
    %cst_15 = arith.constant dense<0.000000e+00> : vector<2x8x128xf32>
    %22 = tpu.matmul %19, %21, %cst_15 {dimension_numbers = #tpu.dot_dimension_numbers<[2], [1], [1], [2], [0, 0, 0, 1, 1, 2], [0], [0]>} : vector<2x8x128xbf16>, vector<2x128x128xbf16>, vector<2x8x128xf32> -> vector<2x8x128xf32>
    "tpu.trace_stop"() : () -> ()
    %23 = vector.shape_cast %22 : vector<2x8x128xf32> to vector<16x128xf32>
    %24 = arith.truncf %23 : vector<16x128xf32> to vector<16x128xbf16>
    %cst_16 = arith.constant dense<0.000000e+00> : vector<16x128xf32>
    %25 = tpu.matmul %24, %1, %cst_16 {dimension_numbers = #tpu.dot_dimension_numbers<[1], [0], [0], [1], [0, 0, 1, 1], [], []>} : vector<16x128xbf16>, vector<128x128xbf16>, vector<16x128xf32> -> vector<16x128xf32>
    %26 = vector.broadcast %4 : vector<1x128xf32> to vector<16x128xf32>
    %27 = arith.addf %25, %26 : vector<16x128xf32>
    %cst_17 = arith.constant 0.000000e+00 : f32
    %28 = vector.broadcast %cst_17 : f32 to vector<16x128xf32>
    %29 = arith.cmpf ogt, %27, %28 : vector<16x128xf32>
    %cst_18 = arith.constant 0.00999999977 : f32
    %30 = vector.broadcast %cst_18 : f32 to vector<16x128xf32>
    %31 = arith.mulf %30, %27 : vector<16x128xf32>
    %32 = arith.select %29, %27, %31 : vector<16x128xi1>, vector<16x128xf32>
    %33 = arith.truncf %32 : vector<16x128xf32> to vector<16x128xbf16>
    %cst_19 = arith.constant dense<0.000000e+00> : vector<16x128xf32>
    %34 = tpu.matmul %33, %2, %cst_19 {dimension_numbers = #tpu.dot_dimension_numbers<[1], [0], [0], [1], [0, 0, 1, 1], [], []>} : vector<16x128xbf16>, vector<128x128xbf16>, vector<16x128xf32> -> vector<16x128xf32>
    %35 = vector.broadcast %5 : vector<1x128xf32> to vector<16x128xf32>
    %36 = arith.addf %34, %35 : vector<16x128xf32>
    %c0_20 = arith.constant 0 : index
    %c0_21 = arith.constant 0 : index
    %37 = vector.load %arg6[%c0_20, %c0_21] : memref<16x128xf32, #tpu.memory_space<vmem>>, vector<16x128xf32>
    tpu.vector_store %arg6[%c0_20, %c0_21], %36 {strides = array<i32>} : memref<16x128xf32, #tpu.memory_space<vmem>>, vector<16x128xf32>,
    return
  }
  func.func @transform_0(%arg0: i32) -> (i32, i32) {
    %c0_i32 = arith.constant 0 : i32
    %c0_i32_0 = arith.constant 0 : i32
    return %arg0, %c0_i32 : i32, i32
  }
  func.func @transform_1(%arg0: i32) -> (i32, i32) {
    %c0_i32 = arith.constant 0 : i32
    %c0_i32_0 = arith.constant 0 : i32
    return %arg0, %c0_i32 : i32, i32
  }
  func.func @transform_2(%arg0: i32) -> (i32, i32) {
    %c0_i32 = arith.constant 0 : i32
    %c0_i32_0 = arith.constant 0 : i32
    return %arg0, %c0_i32 : i32, i32
  }
  func.func @transform_3(%arg0: i32) -> (i32, i32) {
    %c0_i32 = arith.constant 0 : i32
    %c0_i32_0 = arith.constant 0 : i32
    %c0_i32_1 = arith.constant 0 : i32
    return %c0_i32, %c0_i32_0 : i32, i32
  }
  func.func @transform_4(%arg0: i32) -> (i32, i32) {
    %c0_i32 = arith.constant 0 : i32
    %c0_i32_0 = arith.constant 0 : i32
    %c0_i32_1 = arith.constant 0 : i32
    return %c0_i32, %c0_i32_0 : i32, i32
  }
  func.func @transform_5(%arg0: i32) -> (i32, i32) {
    %c0_i32 = arith.constant 0 : i32
    %c0_i32_0 = arith.constant 0 : i32
    return %arg0, %c0_i32 : i32, i32
  }
}

</mosaic_0001>

<bundles_post_ra>
// kernel: tpu_custom_call.1
= control target key start
LH: loop header
LB: loop body
LE: loop exit
PB: predicated region body
PF: predicated region fallthrough
CT: control target
= control target key end

     0   :  { %s2579_s0 = inlined_call_operand.hbm [shape: bf16[1024,128], index: 0, kind: input, shape index: {}]   ;;  %s2580_s1 = inlined_call_operand.hbm [shape: bf16[1024,128], index: 1, kind: input, shape index: {}]   ;;  %s2581_s2 = inlined_call_operand.hbm [shape: bf16[64,128], index: 2, kind: input, shape index: {}]   ;;  %s2582_s3 = inlined_call_operand.hbm [shape: bf16[384,128], index: 3, kind: input, shape index: {}]   ;;  %s2583_s4 = inlined_call_operand.hbm [shape: f32[8,128], index: 4, kind: input, shape index: {}]   ;;  %s2584_s5 = inlined_call_operand.hbm [shape: f32[64,128], index: 5, kind: output, shape index: {}]  }
   0x1   :  { %2595 = sst [smem:[#allocation20_spill]] %s2580_s1 }
   0x2   :  { %2596 = sst [smem:[#allocation21_spill]] %s2582_s3 }
   0x3   :  { %2597 = sst [smem:[#allocation22_spill]] %s2583_s4 }
   0x4   :  { %10 = vsyncpa [#allocation3], 0 }
   0x5   :  { %12 = vsyncpa [#allocation3 + $0x1], 0 }
   0x6   :  { %13 = vsyncpa [#allocation6], 0 }
   0x7   :  { %15 = vsyncpa [#allocation6 + $0x1], 0 }
   0x8   :  { %16 = vsyncpa [#allocation9], 0 }
   0x9   :  { %17 = vsyncpa [#allocation4], 0 }
   0xa   :  { %19 = vsyncpa [#allocation4 + $0x1], 0  ;;  %s2219_s18 = smov 0   ;;  %s2221_s19 = smov 0  }
   0xb   :  { %s2223_s20 = smov 0   ;;  %s2225_s21 = smov 0  }
   0xc LB: > { %2598 = sst [smem:[#allocation16_spill]] %s2177_s20  ;;  %s2240_s22 = sadd.s32 4294967295, %s2181_s21   ;;  %s2181_s21 = sphi %s2225_s21, %s2617_s21   ;;  %s2177_s20 = sphi %s2223_s20, %s2619_s20   ;;  %s2173_s19 = sphi %s2221_s19, %s2621_s19   ;;  %s2169_s18 = sphi %s2219_s18, %s2620_s18  }
   0xd   : > { %s1539_s23 = sadd.s32 4294967294, %s2181_s21   ;;  %p45_p0 = scmp.ne.s32.totalorder %s2173_s19, %s2169_s18 }
   0xe   : > { %p2593_p1 = scmp.eq.s32.totalorder %s2240_s22, 0  ;;  %p163_p2 = scmp.eq.s32.totalorder %s2240_s22, 3 }
   0xf   : > { %p169_p3 = scmp.eq.s32.totalorder %s1539_s23, 3  ;;  %p1540_p5 = scmp.ge.s32.totalorder %s2181_s21, 1 }
  0x10   : > { %p2249_p4 = por %p2593_p1, %p45_p0  ;;  %p176_p7 = scmp.lt.s32.totalorder %s2181_s21, 5 }
  0x11   : > { %p2254_p6 = por %p169_p3, %p45_p0  ;;  %s2602_s3 = sld [smem:[#allocation21_spill]] }
  0x12   : > { %p2262_p8 = pnand %p1540_p5, %p176_p7  ;;  %s2183_s30 = smov [#allocation8]  }
  0x13   : > { %s2600_s25 = scalar_select %p2254_p6, 1, 0 }
  0x14   : > { %p1889_p9 = pneg %p2262_p8  ;;  %s189_s6 = sshll.u32 %s2183_s30, 4  ;;  %s190_s6 = int_to_ptr.vmem [resolvable:$true] %s189_s6 }
  0x15   : > { %2601 = sst [smem:[#allocation17_spill]] %s2600_s25  ;;  %s2275_s8 = sadd.s32 1, %s2181_s21  }
  0x16   : > { %p2270_p10 = pnand %p1889_p9, %p2593_p1  ;;  %2605 = sst [smem:[#allocation18_spill]] %s2275_s8 }
  0x17   : > { %s187_s28 = sshll.u32 %s2602_s3, 4  ;;  %s2585_s9 = smov 64   ;;  %s188_s28 = int_to_ptr.hbm [resolvable:$true] %s187_s28 }
  0x18   : > { %s2587_s10 = smov 4   ;;  %s29_s11 = ssub.s32 %s2181_s21, %s2275_s8 }
  0x19   : > { %1892 = dma.hbm_to_vmem [thread:$0]  (!%p2270_p10), %s188_s28, 3072, %s190_s6, [#allocation9], %s2585_s9, %s2585_s9, %s2587_s10  }
  0x1a   : > { %s32_s12 = sadd.s32 1, %s2177_s20  ;;  %p30_p11 = scmp.eq.s32.totalorder %s29_s11, 0 }
  0x1b   : > { %p39_p12 = scmp.ne.s32.totalorder %s2177_s20, %s2173_s19  ;;  %p40_p13 = scmp.eq.s32.totalorder %s2181_s21, 0 }
  0x1c   : > { %p1912_p0 = scmp.lt.s32.totalorder %s2181_s21, 4  ;;  %s2299_s15 = sand.u32 1, %s2177_s20  }
  0x1d   : > { %s2290_s13 = scalar_select %p30_p11, %s2177_s20, %s32_s12  }
  0x1e   : > { %p41_p3 = por %p40_p13, %p39_p12  ;;  %p2294_p5 = por %p163_p2, %p39_p12 }
  0x1f   : > { %2606 = sst [smem:[#allocation19_spill]] %s2290_s13  ;;  %s1789_s16 = sshll.u32 %s2181_s21, 7 }
  0x20   : > { %s2592_s17 = sshll.u32 %s2299_s15, 7  ;;  %p2303_p7 = pnand %p1912_p0, %p41_p3 }
  0x21   : > { %s237_s26 = sand.u32 1, %s2181_s21   ;;  %s2609_s1 = sld [smem:[#allocation20_spill]] }
  0x22   : > { %s241_s6 = scalar_lea.vmem [#allocation5], %s2592_s17  ;;  %s2610_s4 = sld [smem:[#allocation22_spill]] }
  0x23   : > { %s249_s11 = sshll.u32 %s241_s6, 4  ;;  %s2318_s13 = scalar_lea.sflag [#allocation6], %s237_s26  ;;  %s250_s11 = int_to_ptr.vmem [resolvable:$true] %s249_s11 }
  0x24   : > { %p1991_p9 = pneg %p2303_p7 }
  0x27   : > { %s246_s30 = scalar_lea.hbm %s2609_s1, %s1789_s16 }
  0x28   : > { %s247_s12 = sshll.u32 %s246_s30, 4  ;;  %s202_s3 = sshll.u32 %s2610_s4, 4  ;;  %s248_s12 = int_to_ptr.hbm [resolvable:$true] %s247_s12  ;;  %s203_s3 = int_to_ptr.hbm [resolvable:$true] %s202_s3 }
  0x29   : > { %s1987_s20 = sshra.s32 %s248_s12, 4  ;;  %s1994_s30 = scalar_lea.hbm %s2609_s1, 512  ;;  %s1988_s20 = int_to_ptr.hbm [resolvable:$true] %s1987_s20 }
  0x2a   : > { %s1989_s8 = scalar_lea.hbm %s1988_s20, 128  ;;  %p1995_p13 = scmp.lt.s32.totalorder %s1988_s20, %s2609_s1 }
  0x2b   : > { %p1990_p2 = scmp.ne.s32.totalorder %s1988_s20, %s1989_s8  ;;  %p1996_p0 = scmp.lt.s32.totalorder %s1994_s30, %s1989_s8 }
  0x2d   : > { %p1992_p11 = pnand %p1991_p9, %p1990_p2  ;;  %p1997_p3 = por %p1996_p0, %p1995_p13 }
  0x2f   : > { %p1993_p12 = pneg %p1992_p11 }
  0x31   : > { %p1998_p1 = pnand %p1997_p3, %p1993_p12 }
  0x33   : > { %2001 = shalt.err (!%p1998_p1)
}
  0x34   : > { %s2611_s9 = smov 4   ;;  %s2612_s10 = smov 64  }
  0x35   : > { %1902 = dma.hbm_to_vmem [thread:$0]  (!%p2303_p7), %s248_s12, 2048, %s250_s11, %s2318_s13, %s2612_s10, %s2612_s10, %s2611_s9  }
  0x36   : > { %s2186_s26 = smov [#allocation10]   ;;  %s224_s27 = scalar_lea.hbm %s2579_s0, %s1789_s16 }
  0x37   : > { %s204_s20 = sshll.u32 %s2186_s26, 4  ;;  %s2613_s28 = sshll.u32 %s2299_s15, 7  ;;  %s205_s20 = int_to_ptr.vmem [resolvable:$true] %s204_s20 }
  0x38   : > { %1895 = dma.hbm_to_vmem [thread:$0]  (!%p2270_p10), %s203_s3, 128, %s205_s20, [#allocation9]  }
  0x39   : > { %s219_s30 = scalar_lea.vmem [#allocation2], %s2613_s28  ;;  %s225_s1 = sshll.u32 %s224_s27, 4  ;;  %s226_s1 = int_to_ptr.hbm [resolvable:$true] %s225_s1 }
  0x3a   : > { %s227_s6 = sshll.u32 %s219_s30, 4  ;;  %s1550_s4 = sshll.u32 %s2299_s15, 3  ;;  %s228_s6 = int_to_ptr.vmem [resolvable:$true] %s227_s6 }
  0x3b   : > { %s216_s11 = scalar_lea.sflag [#allocation3], %s2299_s15  ;;  %s2047_s12 = sshra.s32 %s226_s1, 4  ;;  %s2048_s12 = int_to_ptr.hbm [resolvable:$true] %s2047_s12 }
  0x3c   : > { %s2049_s25 = scalar_lea.hbm %s2048_s12, 128  ;;  %s2054_s16 = scalar_lea.hbm %s2579_s0, 512 }
  0x3d   : > { %p2050_p1 = scmp.ne.s32.totalorder %s2048_s12, %s2049_s25  ;;  %p2055_p11 = scmp.lt.s32.totalorder %s2048_s12, %s2579_s0 }
  0x3e   : > { %p2056_p12 = scmp.lt.s32.totalorder %s2054_s16, %s2049_s25 }
  0x3f   : > { %p2052_p10 = pnand %p2050_p1, %p1991_p9 }
  0x40   : > { %p2057_p13 = por %p2056_p12, %p2055_p11 }
  0x41   : > { %p2053_p2 = pneg %p2052_p10 }
  0x43   : > { %p2058_p0 = pnand %p2057_p13, %p2053_p2 }
  0x45   : > { %2061 = shalt.err (!%p2058_p0)
}
  0x46   : > { %1899 = dma.hbm_to_vmem [thread:$0]  (!%p2303_p7), %s226_s1, 2048, %s228_s6, %s216_s11, %s2612_s10, %s2612_s10, %s2611_s9  }
  0x47   : > { %s1791_s15 = sshll.u32 %s2181_s21, 3  ;;  %s263_s28 = scalar_lea.vmem [#allocation7], %s1550_s4 }
  0x48   : > { %s268_s27 = scalar_lea.hbm %s2581_s2, %s1791_s15  ;;  %s271_s30 = sshll.u32 %s263_s28, 4  ;;  %s272_s30 = int_to_ptr.vmem [resolvable:$true] %s271_s30 }
  0x49   : > { %s269_s12 = sshll.u32 %s268_s27, 4  ;;  %s2084_s6 = scalar_lea.hbm %s2581_s2, 32  ;;  %s270_s12 = int_to_ptr.hbm [resolvable:$true] %s269_s12 }
  0x4a   : > { %s2077_s25 = sshra.s32 %s270_s12, 4  ;;  %s2078_s25 = int_to_ptr.hbm [resolvable:$true] %s2077_s25 }
  0x4b   : > { %s2079_s3 = scalar_lea.hbm %s2078_s25, 8  ;;  %p2085_p2 = scmp.lt.s32.totalorder %s2078_s25, %s2581_s2 }
  0x4c   : > { %p2080_p3 = scmp.ne.s32.totalorder %s2078_s25, %s2079_s3  ;;  %p2086_p11 = scmp.lt.s32.totalorder %s2084_s6, %s2079_s3 }
  0x4e   : > { %p2082_p1 = pnand %p2080_p3, %p1991_p9  ;;  %p2087_p12 = por %p2086_p11, %p2085_p2 }
  0x50   : > { %p2083_p10 = pneg %p2082_p1 }
  0x52   : > { %p2088_p13 = pnand %p2087_p12, %p2083_p10 }
  0x54   : > { %2091 = shalt.err (!%p2088_p13)
}
  0x55   : > { %1905 = dma.hbm_to_vmem [thread:$0]  (!%p2303_p7), %s270_s12, 128, %s272_s30, %s2318_s13, %s2612_s10, %s2612_s10, %s2611_s9  }
  0x56   : > { %283 = sbr.rel (%p2262_p8) target bundleno = 1159 (0x487), region = 40  ;;  %s2384_s4 = sand.u32 (!%p2262_p8), 1, %s2173_s19  }
  0x57   : > { %s1554_s26 = sshll.u32 (!%p2262_p8), %s2384_s4, 7  ;;  %s286_s20 = scalar_lea.sflag (!%p2262_p8), [#allocation3], %s2384_s4 }
  0x58   : > { %s2388_s15 = scalar_lea.vmem (!%p2262_p8), [#allocation2], %s1554_s26 }
  0x5b   : > { %2152 = dma.done.wait (%p2249_p4), %s286_s20, 2048  }
  0x5c   : > { %2154 = vsyncadd (%p2249_p4), %s286_s20, 4294965248  ;;  %s295_s13 = sand.u32 1, %s2240_s22   ;;  %s2395_s23 = scalar_lea.vmem [#allocation5], %s1554_s26 }
  0x5d   : > { %s296_s29 = scalar_lea.sflag [#allocation6], %s295_s13 }
  0x5e   : > { %2156 = dma.done.wait (%p2249_p4), %s296_s29, 2176  }
  0x5f   : > { %2158 = vsyncadd (%p2249_p4), %s296_s29, 4294965120  ;;  %s1556_s9 = sshll.u32 %s2384_s4, 3  ;;  %p2614_p8 = scmp.eq.s32.totalorder %s2240_s22, 0 }
  0x60   : > { %s2402_s10 = scalar_lea.vmem [#allocation7], %s1556_s9 }
  0x61   : > { %2160 = dma.done.wait (%p2614_p8), [#allocation9], 3200   ;;  %p2615_p7 = pmov %p2614_p8 }
  0x62   : > { %v1799_v0 = vld [vmem:[#allocation8 + $0x38] sm:$0xff]  ;;  %v1798_v1 = vld [vmem:[#allocation8 + $0x30] sm:$0xff]  ;;  %v1797_v2 = vld [vmem:[#allocation8 + $0x28] sm:$0xff]  ;;  %s1559_s24 = sshll.u32 %s2384_s4, 4  ;;  %s1848_s8 = sshll.u32 %s2240_s22, 4 }
  0x63   : > { %2162 = vsyncadd (%p2615_p7), [#allocation9], 4294964096  ;;  %588 = vmatpush.bf16.msra.mxu0 %v1799_v0  ;;  %1851 = vmatpush.bf16.msra.mxu3 %v1799_v0  ;;  %v1796_v3 = vld [vmem:[#allocation8 + $0x20] sm:$0xff]  ;;  %v1795_v4 = vld [vmem:[#allocation8 + $0x18] sm:$0xff]  ;;  %s1400_s28 = scalar_lea.hbm %s2584_s5, %s1848_s8  ;;  %s356_s30 = scalar_lea.vmem [#allocation11], %s1559_s24 }
  0x64   : > { %1849 = vmatpush.bf16.msra.mxu1 %v1799_v0  ;;  %1850 = vmatpush.bf16.msra.mxu2 %v1799_v0  ;;  %v1794_v5 = vld [vmem:[#allocation8 + $0x10] sm:$0xff]  ;;  %v1793_v6 = vld [vmem:[#allocation8 + $0x8] sm:$0xff]  ;;  %v1792_v7 = vld [vmem:[#allocation8] sm:$0xff]  ;;  %s1401_s12 = sshll.u32 %s356_s30, 4  ;;  %s1403_s25 = sshll.u32 %s1400_s28, 4  ;;  %s1402_s12 = int_to_ptr.vmem [resolvable:$true] %s1401_s12  ;;  %s1404_s25 = int_to_ptr.hbm [resolvable:$true] %s1403_s25 }
  0x65   : > { %v1816_v8 = vld [vmem:[%s2388_s15] sm:$0xff]  ;;  %v1817_v9 = vld [vmem:[%s2388_s15 + $0x8] sm:$0xff]  ;;  %v1818_v11 = vld [vmem:[%s2388_s15 + $0x10] sm:$0xff]  ;;  %s1389_s3 = scalar_lea.sflag [#allocation4], %s2384_s4  ;;  %s2121_s7 = sshra.s32 %s1404_s25, 4  ;;  %s2122_s7 = int_to_ptr.hbm [resolvable:$true] %s2121_s7 }
  0x66   : > { %v1829_v10 = vld [vmem:[%s2388_s15 + $0x68] sm:$0xff]  ;;  %v1830_v12 = vld [vmem:[%s2388_s15 + $0x70] sm:$0xff]  ;;  %v1819_v13 = vld [vmem:[%s2388_s15 + $0x18] sm:$0xff]  ;;  %s2123_s22 = scalar_lea.hbm %s2122_s7, 16  ;;  %s2127_s11 = scalar_lea.hbm %s2584_s5, 64 }
  0x67   : > { %589 = vmatpush.bf16.msra.mxu0 %v1798_v1  ;;  %1854 = vmatpush.bf16.msra.mxu3 %v1798_v1  ;;  %v1831_v14 = vld [vmem:[%s2388_s15 + $0x78] sm:$0xff]  ;;  %v1820_v15 = vld [vmem:[%s2388_s15 + $0x20] sm:$0xff]  ;;  %v1826_v16 = vld [vmem:[%s2388_s15 + $0x50] sm:$0xff]  ;;  %p2124_p4 = scmp.ne.s32.totalorder %s2122_s7, %s2123_s22  ;;  %p2128_p3 = scmp.lt.s32.totalorder %s2122_s7, %s2584_s5 }
  0x68   : > { %1852 = vmatpush.bf16.msra.mxu1 %v1798_v1  ;;  %1853 = vmatpush.bf16.msra.mxu2 %v1798_v1  ;;  %v1821_v17 = vld [vmem:[%s2388_s15 + $0x28] sm:$0xff]  ;;  %v1828_v18 = vld [vmem:[%s2388_s15 + $0x60] sm:$0xff]  ;;  %v1827_v19 = vld [vmem:[%s2388_s15 + $0x58] sm:$0xff]  ;;  %p2129_p1 = scmp.lt.s32.totalorder %s2127_s11, %s2123_s22 }
  0x69   : > { %v1822_v20 = vld [vmem:[%s2388_s15 + $0x30] sm:$0xff]  ;;  %v1823_v21 = vld [vmem:[%s2388_s15 + $0x38] sm:$0xff]  ;;  %v1824_v22 = vld [vmem:[%s2388_s15 + $0x40] sm:$0xff]  ;;  %p2125_p9 = pnand %p2124_p4, %p2294_p5 }
  0x6a   : > { %v1825_v30 = vld [vmem:[%s2388_s15 + $0x48] sm:$0xff]  ;;  %p2130_p10 = por %p2129_p1, %p2128_p3 }
  0x6b   : > { %590 = vmatpush.bf16.msra.mxu0 %v1797_v2  ;;  %1857 = vmatpush.bf16.msra.mxu3 %v1797_v2  ;;  %p2126_p0 = pneg %p2125_p9 }
  0x6c   : > { %1855 = vmatpush.bf16.msra.mxu1 %v1797_v2  ;;  %1856 = vmatpush.bf16.msra.mxu2 %v1797_v2 }
  0x6d   : > { %p2131_p2 = pnand %p2130_p10, %p2126_p0 }
  0x6f   : > { %591 = vmatpush.bf16.msra.mxu0 %v1796_v3  ;;  %1860 = vmatpush.bf16.msra.mxu3 %v1796_v3 }
  0x70   : > { %1858 = vmatpush.bf16.msra.mxu1 %v1796_v3  ;;  %1859 = vmatpush.bf16.msra.mxu2 %v1796_v3 }
  0x73   : > { %592 = vmatpush.bf16.msra.mxu0 %v1795_v4  ;;  %1863 = vmatpush.bf16.msra.mxu3 %v1795_v4 }
  0x74   : > { %1861 = vmatpush.bf16.msra.mxu1 %v1795_v4  ;;  %1862 = vmatpush.bf16.msra.mxu2 %v1795_v4 }
  0x77   : > { %593 = vmatpush.bf16.msra.mxu0 %v1794_v5  ;;  %1866 = vmatpush.bf16.msra.mxu3 %v1794_v5 }
  0x78   : > { %1864 = vmatpush.bf16.msra.mxu1 %v1794_v5  ;;  %1865 = vmatpush.bf16.msra.mxu2 %v1794_v5 }
  0x7b   : > { %594 = vmatpush.bf16.msra.mxu0 %v1793_v6  ;;  %1869 = vmatpush.bf16.msra.mxu3 %v1793_v6 }
  0x7c   : > { %1867 = vmatpush.bf16.msra.mxu1 %v1793_v6  ;;  %1868 = vmatpush.bf16.msra.mxu2 %v1793_v6 }
  0x7f   : > { %595 = vmatpush.bf16.msra.mxu0 %v1792_v7  ;;  %1872 = vmatpush.bf16.msra.mxu3 %v1792_v7 }
  0x80   : > { %1870 = vmatpush.bf16.msra.mxu1 %v1792_v7  ;;  %1871 = vmatpush.bf16.msra.mxu2 %v1792_v7 }
  0x82   : > { %596 = vmatmul.bf16.vlgmr.msra.gmra.mxu0 %v1816_v8  ;;  %661 = vmatmul.bf16.vlgmr.msra.gmra.mxu3 %v1829_v10 }
  0x83   : > { %646 = vmatmul.bf16.vlgmr.msra.gmra.mxu1 %v1826_v16  ;;  %656 = vmatmul.bf16.vlgmr.msra.gmra.mxu2 %v1828_v18 }
  0x92   : > { %601 = vmatmul.bf16.gmra.mxu0 %v1817_v9  ;;  %666 = vmatmul.bf16.gmra.mxu3 %v1830_v12 }
  0x93   : > { %651 = vmatmul.bf16.gmra.mxu1 %v1827_v19 }
  0xa2   : > { %606 = vmatmul.bf16.gmra.mxu0 %v1818_v11  ;;  %671 = vmatmul.bf16.gmra.mxu3 %v1831_v14 }
  0xb2   : > { %611 = vmatmul.bf16.gmra.mxu0 %v1819_v13 }
  0xc2   : > { %616 = vmatmul.bf16.gmra.mxu0 %v1820_v15 }
  0xd2   : > { %621 = vmatmul.bf16.gmra.mxu0 %v1821_v17 }
  0xe2   : > { %626 = vmatmul.bf16.gmra.mxu0 %v1822_v20 }
  0xf2   : > { %631 = vmatmul.bf16.gmra.mxu0 %v1823_v21 }
  0xff   : > { %v597_v23 = vpop.f32.mrf.mxu0 }
 0x100   : > { %v677_v24 = vpack.c.bf16 %v597_v23, %v597_v23  ;;  %v647_v10 = vpop.f32.mrf.mxu1 }
 0x102   : > { %636 = vmatmul.bf16.gmra.mxu0 %v1824_v22  ;;  %v2423_v27 = vunpack.c.l.b16 %v677_v24  ;;  %v697_v24 = vpack.c.bf16 %v647_v10, %v647_v10 }
 0x105   : > { %v662_v33 = vpop.f32.mrf.mxu3 }
 0x106   : > { %v703_v1 = vpack.c.bf16 %v662_v33, %v662_v33  ;;  %v657_v14 = vpop.f32.mrf.mxu2 }
 0x107   : > { %v599_v25 = vpop.f32.mrf.mxu0  ;;  %v701_v17 = vpack.c.bf16 %v657_v14, %v657_v14 }
 0x108   : > { %v678_v26 = vpack.c.bf16 %v599_v25, %v599_v25  ;;  %v960_v6 = vunpack.c.l.b16 %v703_v1  ;;  %v649_v13 = vpop.f32.mrf.mxu1 }
 0x109   : > { %v958_v20 = vunpack.c.l.b16 %v701_v17  ;;  %v1844_v17 = vld [vmem:[%s2395_s23 + $0x60] sm:$0xff] }
 0x10a   : > { %v2425_v28 = vunpack.c.l.b16 %v678_v26  ;;  %v698_v26 = vpack.c.bf16 %v649_v13, %v649_v13 }
 0x10c   : > { %v821_v29 = vpack.c.b16 %v2425_v28, %v2423_v27  ;;  %v1834_v27 = vld [vmem:[%s2395_s23 + $0x10] sm:$0xff] }
 0x10d   : > { %v664_v39 = vpop.f32.mrf.mxu3  ;;  %v1842_v28 = vld [vmem:[%s2395_s23 + $0x50] sm:$0xff] }
 0x10e   : > { %v704_v2 = vpack.c.bf16 %v664_v39, %v664_v39  ;;  %v659_v18 = vpop.f32.mrf.mxu2  ;;  %v955_v39 = vunpack.c.l.b16 %v698_v26 }
 0x10f   : > { %v602_v31 = vpop.f32.mrf.mxu0  ;;  %v702_v22 = vpack.c.bf16 %v659_v18, %v659_v18  ;;  %v1837_v18 = vld [vmem:[%s2395_s23 + $0x28] sm:$0xff] }
 0x110   : > { %v679_v32 = vpack.c.bf16 %v602_v31, %v602_v31  ;;  %v961_v7 = vunpack.c.l.b16 %v704_v2  ;;  %v652_v16 = vpop.f32.mrf.mxu1 }
 0x111   : > { %v699_v21 = vpack.c.bf16 %v652_v16, %v652_v16  ;;  %v959_v23 = vunpack.c.l.b16 %v702_v22  ;;  %v1836_v16 = vld [vmem:[%s2395_s23 + $0x20] sm:$0xff]  ;;  %v1839_v22 = vld [vmem:[%s2395_s23 + $0x38] sm:$0xff] }
 0x112   : > { %641 = vmatmul.bf16.gmra.mxu0 %v1825_v30  ;;  %v2430_v36 = vunpack.c.l.b16 %v679_v32  ;;  %v971_v11 = vpack.c.b16 %v961_v7, %v960_v6 }
 0x113   : > { %v956_v30 = vunpack.c.l.b16 %v699_v21  ;;  %v970_v32 = vpack.c.b16 %v959_v23, %v958_v20  ;;  %v1838_v20 = vld [vmem:[%s2395_s23 + $0x30] sm:$0xff]  ;;  %v1847_v23 = vld [vmem:[%s2395_s23 + $0x78] sm:$0xff] }
 0x114   : > { %v1846_v21 = vld [vmem:[%s2395_s23 + $0x70] sm:$0xff] }
 0x115   : > { %v667_v42 = vpop.f32.mrf.mxu3 }
 0x116   : > { %v705_v60 = vpack.c.bf16 %v667_v42, %v667_v42 }
 0x117   : > { %v604_v34 = vpop.f32.mrf.mxu0 }
 0x118   : > { %v680_v35 = vpack.c.bf16 %v604_v34, %v604_v34  ;;  %v962_v3 = vunpack.c.l.b16 %v705_v60  ;;  %v654_v25 = vpop.f32.mrf.mxu1 }
 0x119   : > { %v700_v31 = vpack.c.bf16 %v654_v25, %v654_v25 }
 0x11a   : > { %v2432_v37 = vunpack.c.l.b16 %v680_v35  ;;  %v954_v35 = vunpack.c.l.b16 %v697_v24  ;;  %v2480_v24 = vld [vmem:[#allocation10] ss:$0 sm:$0xff] }
 0x11b   : > { %v957_v33 = vunpack.c.l.b16 %v700_v31 }
 0x11c   : > { %v822_v38 = vpack.c.b16 %v2432_v37, %v2430_v36 }
 0x11d   : > { %v669_v48 = vpop.f32.mrf.mxu3 }
 0x11e   : > { %v706_v61 = vpack.c.bf16 %v669_v48, %v669_v48 }
 0x11f   : > { %v607_v40 = vpop.f32.mrf.mxu0 }
 0x120   : > { %v681_v41 = vpack.c.bf16 %v607_v40, %v607_v40  ;;  %v963_v4 = vunpack.c.l.b16 %v706_v61  ;;  %v969_v40 = vpack.c.b16 %v957_v33, %v956_v30 }
 0x122   : > { %v2436_v45 = vunpack.c.l.b16 %v681_v41  ;;  %v972_v9 = vpack.c.b16 %v963_v4, %v962_v3  ;;  %v968_v41 = vpack.c.b16 %v955_v39, %v954_v35 }
 0x125   : > { %v672_v51 = vpop.f32.mrf.mxu3 }
 0x126   : > { %v707_v56 = vpack.c.bf16 %v672_v51, %v672_v51 }
 0x127   : > { %v609_v43 = vpop.f32.mrf.mxu0 }
 0x128   : > { %v682_v44 = vpack.c.bf16 %v609_v43, %v609_v43  ;;  %v964_v62 = vunpack.c.l.b16 %v707_v56 }
 0x12a   : > { %v2438_v46 = vunpack.c.l.b16 %v682_v44 }
 0x12c   : > { %v823_v47 = vpack.c.b16 %v2438_v46, %v2436_v45 }
 0x12d   : > { %v674_v58 = vpop.f32.mrf.mxu3 }
 0x12e   : > { %v708_v63 = vpack.c.bf16 %v674_v58, %v674_v58 }
 0x12f   : > { %v612_v49 = vpop.f32.mrf.mxu0 }
 0x130   : > { %v683_v50 = vpack.c.bf16 %v612_v49, %v612_v49  ;;  %v965_v0 = vunpack.c.l.b16 %v708_v63 }
 0x132   : > { %v2442_v54 = vunpack.c.l.b16 %v683_v50  ;;  %v973_v5 = vpack.c.b16 %v965_v0, %v964_v62 }
 0x134   : > { %982 = vmatpush.bf16.msrb.mxu2 %v973_v5 }
 0x137   : > { %v614_v52 = vpop.f32.mrf.mxu0 }
 0x138   : > { %v684_v53 = vpack.c.bf16 %v614_v52, %v614_v52  ;;  %983 = vmatpush.bf16.msrb.mxu2 %v972_v9 }
 0x13a   : > { %v2444_v55 = vunpack.c.l.b16 %v684_v53 }
 0x13c   : > { %v824_v57 = vpack.c.b16 %v2444_v55, %v2442_v54  ;;  %984 = vmatpush.bf16.msrb.mxu2 %v971_v11  ;;  %v1832_v54 = vld [vmem:[%s2395_s23] sm:$0xff] }
 0x13f   : > { %v2448_v59 = vpop.f32.mrf.mxu0 }
 0x140   : > { %985 = vmatpush.bf16.msrb.mxu2 %v970_v32  ;;  %v685_v2 = vpack.c.bf16 %v2448_v59, %v2448_v59 }
 0x142   : > { %v813_v6 = vunpack.c.l.b16 %v685_v2 }
 0x144   : > { %986 = vmatpush.bf16.msrb.mxu2 %v969_v40 }
 0x147   : > { %v619_v8 = vpop.f32.mrf.mxu0 }
 0x148   : > { %987 = vmatpush.bf16.msrb.mxu2 %v968_v41  ;;  %v686_v63 = vpack.c.bf16 %v619_v8, %v619_v8 }
 0x14a   : > { %v814_v4 = vunpack.c.l.b16 %v686_v63 }
 0x14c   : > { %v825_v9 = vpack.c.b16 %v814_v4, %v813_v6 }
 0x14f   : > { %v622_v12 = vpop.f32.mrf.mxu0 }
 0x150   : > { %v687_v60 = vpack.c.bf16 %v622_v12, %v622_v12 }
 0x152   : > { %v815_v3 = vunpack.c.l.b16 %v687_v60 }
 0x157   : > { %v624_v15 = vpop.f32.mrf.mxu0 }
 0x158   : > { %v688_v53 = vpack.c.bf16 %v624_v15, %v624_v15  ;;  %v1843_v15 = vld [vmem:[%s2395_s23 + $0x58] sm:$0xff] }
 0x15a   : > { %v816_v0 = vunpack.c.l.b16 %v688_v53 }
 0x15c   : > { %v826_v5 = vpack.c.b16 %v816_v0, %v815_v3 }
 0x15f   : > { %v627_v19 = vpop.f32.mrf.mxu0 }
 0x160   : > { %v689_v50 = vpack.c.bf16 %v627_v19, %v627_v19  ;;  %v1845_v19 = vld [vmem:[%s2395_s23 + $0x68] sm:$0xff] }
 0x162   : > { %v817_v61 = vunpack.c.l.b16 %v689_v50 }
 0x167   : > { %v629_v34 = vpop.f32.mrf.mxu0 }
 0x168   : > { %v690_v48 = vpack.c.bf16 %v629_v34, %v629_v34 }
 0x16a   : > { %v818_v56 = vunpack.c.l.b16 %v690_v48 }
 0x16c   : > { %v827_v1 = vpack.c.b16 %v818_v56, %v817_v61 }
 0x16f   : > { %v632_v42 = vpop.f32.mrf.mxu0 }
 0x170   : > { %v691_v43 = vpack.c.bf16 %v632_v42, %v632_v42 }
 0x172   : > { %v819_v51 = vunpack.c.l.b16 %v691_v43 }
 0x177   : > { %v634_v44 = vpop.f32.mrf.mxu0 }
 0x178   : > { %v692_v49 = vpack.c.bf16 %v634_v44, %v634_v44 }
 0x17a   : > { %v820_v52 = vunpack.c.l.b16 %v692_v49 }
 0x17c   : > { %v828_v58 = vpack.c.b16 %v820_v52, %v819_v51 }
 0x17e   : > { %837 = vmatpush.bf16.msrb.mxu1 %v828_v58 }
 0x17f   : > { %v637_v62 = vpop.f32.mrf.mxu0 }
 0x180   : > { %v693_v11 = vpack.c.bf16 %v637_v62, %v637_v62 }
 0x182   : > { %838 = vmatpush.bf16.msrb.mxu1 %v827_v1  ;;  %v950_v45 = vunpack.c.l.b16 %v693_v11 }
 0x186   : > { %839 = vmatpush.bf16.msrb.mxu1 %v826_v5 }
 0x187   : > { %v639_v7 = vpop.f32.mrf.mxu0 }
 0x188   : > { %v694_v12 = vpack.c.bf16 %v639_v7, %v639_v7 }
 0x18a   : > { %840 = vmatpush.bf16.msrb.mxu1 %v825_v9  ;;  %v951_v46 = vunpack.c.l.b16 %v694_v12 }
 0x18c   : > { %v966_v37 = vpack.c.b16 %v951_v46, %v950_v45 }
 0x18e   : > { %841 = vmatpush.bf16.msrb.mxu1 %v824_v57  ;;  %v1841_v57 = vld [vmem:[%s2395_s23 + $0x48] sm:$0xff] }
 0x18f   : > { %v642_v8 = vpop.f32.mrf.mxu0 }
 0x190   : > { %v695_v59 = vpack.c.bf16 %v642_v8, %v642_v8 }
 0x192   : > { %842 = vmatpush.bf16.msrb.mxu1 %v823_v47  ;;  %v952_v13 = vunpack.c.l.b16 %v695_v59  ;;  %v1833_v47 = vld [vmem:[%s2395_s23 + $0x8] sm:$0xff] }
 0x196   : > { %843 = vmatpush.bf16.msrb.mxu1 %v822_v38  ;;  %v1840_v38 = vld [vmem:[%s2395_s23 + $0x40] sm:$0xff] }
 0x197   : > { %v644_v10 = vpop.f32.mrf.mxu0 }
 0x198   : > { %v696_v14 = vpack.c.bf16 %v644_v10, %v644_v10 }
 0x19a   : > { %v953_v55 = vunpack.c.l.b16 %v696_v14  ;;  %844 = vmatpush.bf16.msrb.mxu1 %v821_v29  ;;  %v1835_v29 = vld [vmem:[%s2395_s23 + $0x18] sm:$0xff] }
 0x19c   : > { %v967_v36 = vpack.c.b16 %v953_v55, %v952_v13 }
 0x19d   : > { %845 = vmatmul.bf16.vlgmr.msrb.gmra.mxu1 %v1832_v54 }
 0x19e   : > { %988 = vmatpush.bf16.msrb.mxu2 %v967_v36 }
 0x1a2   : > { %989 = vmatpush.bf16.msrb.mxu2 %v966_v37 }
 0x1a5   : > { %990 = vmatmul.bf16.vlgmr.msrb.gmra.mxu2 %v1840_v38 }
 0x1ad   : > { %850 = vmatmul.bf16.gmra.mxu1 %v1833_v47 }
 0x1b5   : > { %995 = vmatmul.bf16.gmra.mxu2 %v1841_v57 }
 0x1bd   : > { %855 = vmatmul.bf16.gmra.mxu1 %v1834_v27 }
 0x1c5   : > { %1000 = vmatmul.bf16.gmra.mxu2 %v1842_v28 }
 0x1cd   : > { %860 = vmatmul.bf16.gmra.mxu1 %v1835_v29 }
 0x1d5   : > { %1005 = vmatmul.bf16.gmra.mxu2 %v1843_v15 }
 0x1dd   : > { %865 = vmatmul.bf16.gmra.mxu1 %v1836_v16 }
 0x1e5   : > { %1010 = vmatmul.bf16.gmra.mxu2 %v1844_v17 }
 0x1ed   : > { %870 = vmatmul.bf16.gmra.mxu1 %v1837_v18 }
 0x1f5   : > { %1015 = vmatmul.bf16.gmra.mxu2 %v1845_v19 }
 0x1fd   : > { %875 = vmatmul.bf16.gmra.mxu1 %v1838_v20 }
 0x205   : > { %1020 = vmatmul.bf16.gmra.mxu2 %v1846_v21 }
 0x20d   : > { %880 = vmatmul.bf16.gmra.mxu1 %v1839_v22 }
 0x215   : > { %1025 = vmatmul.bf16.gmra.mxu2 %v1847_v23 }
 0x21a   : > { %v846_v25 = vpop.f32.mrf.mxu1 }
 0x21b   : > { %v1032_v26 = vadd.f32 %v2480_v24, %v846_v25 }
 0x21d   : > { %v1064_v30 = vmax.f32 %v1032_v26, 0.0 }
 0x21f   : > { %v1098_v33 = vpack.c.bf16 %v1064_v30, %v1064_v30 }
 0x221   : > { %v1146_v40 = vunpack.c.l.b16 %v1098_v33 }
 0x222   : > { %v848_v31 = vpop.f32.mrf.mxu1 }
 0x223   : > { %v1033_v32 = vadd.f32 %v2480_v24, %v848_v31 }
 0x225   : > { %v1065_v34 = vmax.f32 %v1033_v32, 0.0 }
 0x227   : > { %v1099_v35 = vpack.c.bf16 %v1065_v34, %v1065_v34 }
 0x228   : > { %v991_v39 = vpop.f32.mrf.mxu2 }
 0x229   : > { %v1147_v41 = vunpack.c.l.b16 %v1099_v35  ;;  %v1048_v42 = vadd.f32 %v2480_v24, %v991_v39 }
 0x22a   : > { %v851_v43 = vpop.f32.mrf.mxu1 }
 0x22b   : > { %v2485_v44 = vpack.c.b16 %v1147_v41, %v1146_v40  ;;  %v1034_v48 = vadd.f32 %v2480_v24, %v851_v43  ;;  %v1080_v49 = vmax.f32 %v1048_v42, 0.0 }
 0x22d   : > { %v1066_v51 = vmax.f32 %v1034_v48, 0.0  ;;  %v1114_v52 = vpack.c.bf16 %v1080_v49, %v1080_v49 }
 0x22f   : > { %v1100_v61 = vpack.c.bf16 %v1066_v51, %v1066_v51  ;;  %v1207_v63 = vunpack.c.l.b16 %v1114_v52 }
 0x230   : > { %v993_v50 = vpop.f32.mrf.mxu2 }
 0x231   : > { %v1049_v53 = vadd.f32 %v2480_v24, %v993_v50  ;;  %v1148_v4 = vunpack.c.l.b16 %v1100_v61 }
 0x232   : > { %v853_v56 = vpop.f32.mrf.mxu1 }
 0x233   : > { %v1035_v58 = vadd.f32 %v2480_v24, %v853_v56  ;;  %v1081_v60 = vmax.f32 %v1049_v53, 0.0 }
 0x235   : > { %v1067_v62 = vmax.f32 %v1035_v58, 0.0  ;;  %v1115_v0 = vpack.c.bf16 %v1081_v60, %v1081_v60 }
 0x237   : > { %v1101_v1 = vpack.c.bf16 %v1067_v62, %v1067_v62  ;;  %v1208_v2 = vunpack.c.l.b16 %v1115_v0 }
 0x238   : > { %v996_v3 = vpop.f32.mrf.mxu2 }
 0x239   : > { %v1149_v5 = vunpack.c.l.b16 %v1101_v1  ;;  %v1050_v6 = vadd.f32 %v2480_v24, %v996_v3  ;;  %v2491_v7 = vpack.c.b16 %v1208_v2, %v1207_v63 }
 0x23a   : > { %v856_v9 = vpop.f32.mrf.mxu1 }
 0x23b   : > { %v2493_v8 = vpack.c.b16 %v1149_v5, %v1148_v4  ;;  %v1036_v59 = vadd.f32 %v2480_v24, %v856_v9  ;;  %v1082_v10 = vmax.f32 %v1050_v6, 0.0 }
 0x23d   : > { %v1068_v12 = vmax.f32 %v1036_v59, 0.0  ;;  %v1116_v13 = vpack.c.bf16 %v1082_v10, %v1082_v10 }
 0x23f   : > { %v1102_v46 = vpack.c.bf16 %v1068_v12, %v1068_v12  ;;  %v1209_v37 = vunpack.c.l.b16 %v1116_v13 }
 0x240   : > { %v998_v11 = vpop.f32.mrf.mxu2 }
 0x241   : > { %v1051_v14 = vadd.f32 %v2480_v24, %v998_v11  ;;  %v1150_v28 = vunpack.c.l.b16 %v1102_v46 }
 0x242   : > { %v858_v54 = vpop.f32.mrf.mxu1 }
 0x243   : > { %v1037_v55 = vadd.f32 %v2480_v24, %v858_v54  ;;  %v1083_v45 = vmax.f32 %v1051_v14, 0.0 }
 0x245   : > { %v1069_v36 = vmax.f32 %v1037_v55, 0.0  ;;  %v1117_v38 = vpack.c.bf16 %v1083_v45, %v1083_v45 }
 0x247   : > { %v1103_v47 = vpack.c.bf16 %v1069_v36, %v1069_v36  ;;  %v1210_v57 = vunpack.c.l.b16 %v1117_v38 }
 0x248   : > { %v1001_v27 = vpop.f32.mrf.mxu2 }
 0x249   : > { %v1151_v29 = vunpack.c.l.b16 %v1103_v47  ;;  %v1052_v15 = vadd.f32 %v2480_v24, %v1001_v27  ;;  %v2499_v16 = vpack.c.b16 %v1210_v57, %v1209_v37 }
 0x24a   : > { %v861_v17 = vpop.f32.mrf.mxu1 }
 0x24b   : > { %v2501_v18 = vpack.c.b16 %v1151_v29, %v1150_v28  ;;  %v1038_v19 = vadd.f32 %v2480_v24, %v861_v17  ;;  %v1084_v20 = vmax.f32 %v1052_v15, 0.0 }
 0x24d   : > { %v1070_v22 = vmax.f32 %v1038_v19, 0.0  ;;  %v1118_v23 = vpack.c.bf16 %v1084_v20, %v1084_v20 }
 0x24f   : > { %v1104_v32 = vpack.c.bf16 %v1070_v22, %v1070_v22  ;;  %v1211_v34 = vunpack.c.l.b16 %v1118_v23 }
 0x250   : > { %v1003_v21 = vpop.f32.mrf.mxu2 }
 0x251   : > { %v1053_v25 = vadd.f32 %v2480_v24, %v1003_v21  ;;  %v1152_v42 = vunpack.c.l.b16 %v1104_v32 }
 0x252   : > { %v863_v26 = vpop.f32.mrf.mxu1 }
 0x253   : > { %v1039_v30 = vadd.f32 %v2480_v24, %v863_v26  ;;  %v1085_v31 = vmax.f32 %v1053_v25, 0.0 }
 0x255   : > { %v1071_v33 = vmax.f32 %v1039_v30, 0.0  ;;  %v1119_v35 = vpack.c.bf16 %v1085_v31, %v1085_v31 }
 0x257   : > { %v1105_v39 = vpack.c.bf16 %v1071_v33, %v1071_v33  ;;  %v1212_v40 = vunpack.c.l.b16 %v1119_v35 }
 0x258   : > { %v1006_v41 = vpop.f32.mrf.mxu2 }
 0x259   : > { %v1153_v43 = vunpack.c.l.b16 %v1105_v39  ;;  %v1054_v48 = vadd.f32 %v2480_v24, %v1006_v41  ;;  %v2507_v49 = vpack.c.b16 %v1212_v40, %v1211_v34 }
 0x25a   : > { %v866_v50 = vpop.f32.mrf.mxu1 }
 0x25b   : > { %v2509_v51 = vpack.c.b16 %v1153_v43, %v1152_v42  ;;  %v1086_v52 = vmax.f32 %v1054_v48, 0.0  ;;  %v1040_v20 = vadd.f32 %v2480_v24, %v866_v50 }
 0x25d   : > { %v1120_v56 = vpack.c.bf16 %v1086_v52, %v1086_v52  ;;  %v1072_v34 = vmax.f32 %v1040_v20, 0.0 }
 0x25f   : > { %v1213_v62 = vunpack.c.l.b16 %v1120_v56  ;;  %v1106_v43 = vpack.c.bf16 %v1072_v34, %v1072_v34  ;;  %v1812_v34 = vld [vmem:[#allocation8 + $0xa0] sm:$0xff] }
 0x260   : > { %v1008_v53 = vpop.f32.mrf.mxu2 }
 0x261   : > { %v1055_v58 = vadd.f32 %v2480_v24, %v1008_v53  ;;  %v1154_v53 = vunpack.c.l.b16 %v1106_v43  ;;  %v1809_v43 = vld [vmem:[#allocation8 + $0x88] sm:$0xff] }
 0x262   : > { %v868_v60 = vpop.f32.mrf.mxu1 }
 0x263   : > { %v1087_v61 = vmax.f32 %v1055_v58, 0.0  ;;  %v1041_v29 = vadd.f32 %v2480_v24, %v868_v60 }
 0x265   : > { %v1121_v63 = vpack.c.bf16 %v1087_v61, %v1087_v61  ;;  %v1073_v26 = vmax.f32 %v1041_v29, 0.0 }
 0x267   : > { %v1214_v0 = vunpack.c.l.b16 %v1121_v63  ;;  %v1107_v40 = vpack.c.bf16 %v1073_v26, %v1073_v26  ;;  %v1803_v26 = vld [vmem:[#allocation8 + $0x58] sm:$0xff] }
 0x268   : > { %v2512_v1 = vpop.f32.mrf.mxu2 }
 0x269   : > { %v2514_v2 = vpack.c.b16 %v1214_v0, %v1213_v62  ;;  %v1155_v50 = vunpack.c.l.b16 %v1107_v40 }
 0x26a   : > { %v871_v3 = vpop.f32.mrf.mxu1 }
 0x26b   : > { %v1042_v47 = vadd.f32 %v2480_v24, %v871_v3  ;;  %v1166_v58 = vpack.c.b16 %v1155_v50, %v1154_v53 }
 0x26d   : > { %v1074_v21 = vmax.f32 %v1042_v47, 0.0 }
 0x26f   : > { %v1108_v35 = vpack.c.bf16 %v1074_v21, %v1074_v21  ;;  %v1097_v21 = vld [vmem:[%s2402_s10 + $0x4] sm:$0xf] }
 0x270   : > { %v2516_v4 = vpop.f32.mrf.mxu2 }
 0x271   : > { %v1156_v48 = vunpack.c.l.b16 %v1108_v35 }
 0x272   : > { %v873_v5 = vpop.f32.mrf.mxu1 }
 0x273   : > { %v1043_v36 = vadd.f32 %v2480_v24, %v873_v5 }
 0x275   : > { %v1075_v15 = vmax.f32 %v1043_v36, 0.0 }
 0x277   : > { %v1109_v30 = vpack.c.bf16 %v1075_v15, %v1075_v15 }
 0x278   : > { %v1016_v6 = vpop.f32.mrf.mxu2 }
 0x279   : > { %v1157_v41 = vunpack.c.l.b16 %v1109_v30  ;;  %v1058_v5 = vadd.f32 %v2480_v24, %v1016_v6  ;;  %v1802_v30 = vld [vmem:[#allocation8 + $0x50] sm:$0xff] }
 0x27a   : > { %v876_v9 = vpop.f32.mrf.mxu1 }
 0x27b   : > { %v1044_v54 = vadd.f32 %v2480_v24, %v876_v9  ;;  %v1167_v52 = vpack.c.b16 %v1157_v41, %v1156_v48  ;;  %v1811_v41 = vld [vmem:[#allocation8 + $0x98] sm:$0xff]  ;;  %v1808_v48 = vld [vmem:[#allocation8 + $0x80] sm:$0xff] }
 0x27d   : > { %v1076_v57 = vmax.f32 %v1044_v54, 0.0  ;;  %v1056_v54 = vadd.f32 %v2480_v24, %v2512_v1  ;;  %v1096_v1 = vld [vmem:[%s2402_s10] sm:$0xf] }
 0x27f   : > { %v1110_v22 = vpack.c.bf16 %v1076_v57, %v1076_v57 }
 0x280   : > { %v1018_v59 = vpop.f32.mrf.mxu2 }
 0x281   : > { %v1158_v39 = vunpack.c.l.b16 %v1110_v22  ;;  %v1059_v9 = vadd.f32 %v2480_v24, %v1018_v59  ;;  %v1088_v59 = vmax.f32 %v1056_v54, 0.0  ;;  %v1806_v22 = vld [vmem:[#allocation8 + $0x70] sm:$0xff] }
 0x282   : > { %v878_v10 = vpop.f32.mrf.mxu1 }
 0x283   : > { %v1045_v14 = vadd.f32 %v2480_v24, %v878_v10 }
 0x285   : > { %v1077_v37 = vmax.f32 %v1045_v14, 0.0 }
 0x287   : > { %v1111_v17 = vpack.c.bf16 %v1077_v37, %v1077_v37 }
 0x288   : > { %v1021_v11 = vpop.f32.mrf.mxu2 }
 0x289   : > { %v1159_v31 = vunpack.c.l.b16 %v1111_v17  ;;  %v1060_v62 = vadd.f32 %v2480_v24, %v1021_v11  ;;  %v1057_v11 = vadd.f32 %v2480_v24, %v2516_v4 }
 0x28a   : > { %v881_v12 = vpop.f32.mrf.mxu1 }
 0x28b   : > { %v1046_v13 = vadd.f32 %v2480_v24, %v881_v12  ;;  %v1168_v42 = vpack.c.b16 %v1159_v31, %v1158_v39  ;;  %v1092_v10 = vmax.f32 %v1060_v62, 0.0  ;;  %v1089_v37 = vmax.f32 %v1057_v11, 0.0  ;;  %v1815_v31 = vld [vmem:[#allocation8 + $0xb8] sm:$0xff] }
 0x28d   : > { %v1078_v55 = vmax.f32 %v1046_v13, 0.0  ;;  %v1123_v4 = vpack.c.bf16 %v1089_v37, %v1089_v37 }
 0x28f   : > { %v1112_v27 = vpack.c.bf16 %v1078_v55, %v1078_v55  ;;  %v1090_v55 = vmax.f32 %v1058_v5, 0.0  ;;  %v1216_v17 = vunpack.c.l.b16 %v1123_v4 }
 0x290   : > { %v1023_v45 = vpop.f32.mrf.mxu2 }
 0x291   : > { %v1160_v23 = vunpack.c.l.b16 %v1112_v27  ;;  %v1061_v63 = vadd.f32 %v2480_v24, %v1023_v45  ;;  %v1091_v45 = vmax.f32 %v1059_v9, 0.0 }
 0x292   : > { %v883_v46 = vpop.f32.mrf.mxu1 }
 0x293   : > { %v1047_v38 = vadd.f32 %v2480_v24, %v883_v46  ;;  %v1093_v12 = vmax.f32 %v1061_v63, 0.0  ;;  %v1125_v47 = vpack.c.bf16 %v1091_v45, %v1091_v45 }
 0x295   : > { %v1079_v28 = vmax.f32 %v1047_v38, 0.0  ;;  %v1127_v46 = vpack.c.bf16 %v1093_v12, %v1093_v12  ;;  %v1124_v38 = vpack.c.bf16 %v1090_v55, %v1090_v55  ;;  %v1218_v29 = vunpack.c.l.b16 %v1125_v47 }
 0x297   : > { %v1113_v19 = vpack.c.bf16 %v1079_v28, %v1079_v28  ;;  %v1220_v57 = vunpack.c.l.b16 %v1127_v46  ;;  %v1217_v28 = vunpack.c.l.b16 %v1124_v38 }
 0x298   : > { %v1026_v33 = vpop.f32.mrf.mxu2 }
 0x299   : > { %v1161_v25 = vunpack.c.l.b16 %v1113_v19  ;;  %v1062_v60 = vadd.f32 %v2480_v24, %v1026_v33  ;;  %v1228_v19 = vpack.c.b16 %v1218_v29, %v1217_v28  ;;  %v1813_v33 = vld [vmem:[#allocation8 + $0xa8] sm:$0xff] }
 0x29b   : > { %v1169_v32 = vpack.c.b16 %v1161_v25, %v1160_v23  ;;  %v1094_v0 = vmax.f32 %v1062_v60, 0.0  ;;  %v1805_v23 = vld [vmem:[#allocation8 + $0x68] sm:$0xff]  ;;  %v1804_v25 = vld [vmem:[#allocation8 + $0x60] sm:$0xff] }
 0x29d   : > { %1178 = vmatpush.bf16.msrb.mxu3 %v1169_v32  ;;  %v1128_v13 = vpack.c.bf16 %v1094_v0, %v1094_v0 }
 0x29f   : > { %v1221_v6 = vunpack.c.l.b16 %v1128_v13 }
 0x2a0   : > { %v1028_v56 = vpop.f32.mrf.mxu2 }
 0x2a1   : > { %1179 = vmatpush.bf16.msrb.mxu3 %v1168_v42  ;;  %v1063_v61 = vadd.f32 %v2480_v24, %v1028_v56  ;;  %v1122_v24 = vpack.c.bf16 %v1088_v59, %v1088_v59  ;;  %v1810_v42 = vld [vmem:[#allocation8 + $0x90] sm:$0xff] }
 0x2a3   : > { %v1095_v3 = vmax.f32 %v1063_v61, 0.0 }
 0x2a5   : > { %1180 = vmatpush.bf16.msrb.mxu3 %v1167_v52  ;;  %v1129_v14 = vpack.c.bf16 %v1095_v3, %v1095_v3  ;;  %v1955_v52 = vld [vmem:[#allocation10 + $0x1] ss:$0 sm:$0xff]  ;;  %v1956_v3 = vld [vmem:[#allocation10 + $0x2] ss:$0 sm:$0xff] }
 0x2a7   : > { %v1222_v36 = vunpack.c.l.b16 %v1129_v14 }
 0x2a9   : > { %1181 = vmatpush.bf16.msrb.mxu3 %v1166_v58  ;;  %v1230_v27 = vpack.c.b16 %v1222_v36, %v1221_v6 }
 0x2ad   : > { %1182 = vmatpush.bf16.msrb.mxu3 %v2509_v51  ;;  %v1126_v51 = vpack.c.bf16 %v1092_v10, %v1092_v10 }
 0x2b1   : > { %1183 = vmatpush.bf16.msrb.mxu3 %v2501_v18  ;;  %v1219_v18 = vunpack.c.l.b16 %v1126_v51 }
 0x2b3   : > { %v1229_v15 = vpack.c.b16 %v1220_v57, %v1219_v18 }
 0x2b5   : > { %1184 = vmatpush.bf16.msrb.mxu3 %v2493_v8  ;;  %v1215_v8 = vunpack.c.l.b16 %v1122_v24 }
 0x2b7   : > { %v1227_v20 = vpack.c.b16 %v1216_v17, %v1215_v8 }
 0x2b9   : > { %1185 = vmatpush.bf16.msrb.mxu3 %v2485_v44  ;;  %v1807_v44 = vld [vmem:[#allocation8 + $0x78] sm:$0xff] }
 0x2bc   : > { %1186 = vmatmul.bf16.vlgmr.msrb.gmra.mxu3 %v1096_v1 }
 0x2bd   : > { %1239 = vmatpush.bf16.msra.mxu3 %v1230_v27 }
 0x2c1   : > { %1240 = vmatpush.bf16.msra.mxu3 %v1229_v15 }
 0x2c5   : > { %1241 = vmatpush.bf16.msra.mxu3 %v1228_v19 }
 0x2c9   : > { %1242 = vmatpush.bf16.msra.mxu3 %v1227_v20 }
 0x2cd   : > { %1243 = vmatpush.bf16.msra.mxu3 %v2514_v2  ;;  %v1801_v2 = vld [vmem:[#allocation8 + $0x48] sm:$0xff] }
 0x2d1   : > { %1244 = vmatpush.bf16.msra.mxu3 %v2507_v49  ;;  %v1800_v49 = vld [vmem:[#allocation8 + $0x40] sm:$0xff] }
 0x2d5   : > { %1245 = vmatpush.bf16.msra.mxu3 %v2499_v16 }
 0x2d9   : > { %1246 = vmatpush.bf16.msra.mxu3 %v2491_v7  ;;  %v1814_v7 = vld [vmem:[#allocation8 + $0xb0] sm:$0xff] }
 0x2dc   : > { %1247 = vmatmul.bf16.vlgmr.msra.gmra.mxu3 %v1097_v21 }
 0x2dd   : > { %1302 = vmatpush.bf16.msrb.mxu3 %v1807_v44 }
 0x2e1   : > { %1303 = vmatpush.bf16.msrb.mxu3 %v1806_v22 }
 0x2e5   : > { %1304 = vmatpush.bf16.msrb.mxu3 %v1805_v23 }
 0x2e9   : > { %1305 = vmatpush.bf16.msrb.mxu3 %v1804_v25 }
 0x2ed   : > { %1306 = vmatpush.bf16.msrb.mxu3 %v1803_v26 }
 0x2f1   : > { %1307 = vmatpush.bf16.msrb.mxu3 %v1802_v30 }
 0x2f5   : > { %1308 = vmatpush.bf16.msrb.mxu3 %v1801_v2 }
 0x2f9   : > { %1309 = vmatpush.bf16.msrb.mxu3 %v1800_v49 }
 0x2fd   : > { %1372 = vmatpush.bf16.msra.mxu3 %v1815_v31 }
 0x301   : > { %1373 = vmatpush.bf16.msra.mxu3 %v1814_v7 }
 0x305   : > { %1374 = vmatpush.bf16.msra.mxu3 %v1813_v33 }
 0x309   : > { %1375 = vmatpush.bf16.msra.mxu3 %v1812_v34 }
 0x30d   : > { %1376 = vmatpush.bf16.msra.mxu3 %v1811_v41 }
 0x311   : > { %1377 = vmatpush.bf16.msra.mxu3 %v1810_v42 }
 0x315   : > { %1378 = vmatpush.bf16.msra.mxu3 %v1809_v43 }
 0x319   : > { %1379 = vmatpush.bf16.msra.mxu3 %v1808_v48 }
 0x33f   : > { %v1187_v16 = vpop.f32.mrf.mxu3 }
 0x347   : > { %v1189_v32 = vpop.f32.mrf.mxu3 }
 0x35f   : > { %v1248_v35 = vpop.f32.mrf.mxu3 }
 0x360   : > { %v1252_v39 = vpack.c.bf16 %v1248_v35, %v1187_v16 }
 0x362   : > { %1310 = vmatmul.bf16.vlgmr.msrb.gmra.mxu3 %v1252_v39 }
 0x367   : > { %v1250_v40 = vpop.f32.mrf.mxu3 }
 0x3e5   : > { %v1311_v50 = vpop.f32.mrf.mxu3 }
 0x3e6   : > { %v1312_v53 = vadd.f32 %v1955_v52, %v1311_v50 }
 0x3e8   : > { %v1318_v58 = vmul.f32 0.01, %v1312_v53  ;;  %vm1316_vm0 = vcmp.gt.f32.partialorder %v1312_v53, 0.0 }
 0x3ea   : > { %v1320_v62 = vsel %vm1316_vm0, %v1312_v53, %v1318_v58 }
 0x3ed   : > { %v1313_v56 = vpop.f32.mrf.mxu3 }
 0x3ee   : > { %v1314_v60 = vadd.f32 %v1955_v52, %v1313_v56 }
 0x3f0   : > { %vm1317_vm1 = vcmp.gt.f32.partialorder %v1314_v60, 0.0  ;;  %v1319_v61 = vmul.f32 0.01, %v1314_v60 }
 0x3f2   : > { %v1321_v63 = vsel %vm1317_vm1, %v1314_v60, %v1319_v61 }
 0x3f3   : > { %v1322_v0 = vpack.c.bf16 %v1321_v63, %v1320_v62 }
 0x3f5   : > { %1380 = vmatmul.bf16.vlgmr.msra.gmra.mxu3 %v1322_v0 }
 0x478   : > { %v1381_v5 = vpop.f32.mrf.mxu3 }
 0x479   : > { %v1382_v9 = vadd.f32 %v1956_v3, %v1381_v5 }
 0x47b   : > { %1386 = vst [vmem:[%s356_s30] sm:$0xff] %v1382_v9 }
 0x480   : > { %v1383_v10 = vpop.f32.mrf.mxu3 }
 0x481   : > { %v1384_v12 = vadd.f32 %v1956_v3, %v1383_v10 }
 0x483   : > { %1387 = vst [vmem:[%s356_s30 + $0x8] sm:$0xff] %v1384_v12 }
 0x484   : > { %2134 = shalt.err (!%p2131_p2)
}
 0x485   : > { %s2187_s4 = smov 128   ;;  %s2188_s20 = smov 8  }
 0x486   : > { %1887 = dma.vmem_to_hbm [thread:$0]  (%p2294_p5), %s1402_s12, 256, %s1404_s25, %s1389_s3, %s2187_s4, %s2187_s4, %s2188_s20  }
 0x487 PF: > { %p1915_p11 = scmp.ge.s32.totalorder %s2181_s21, 2  ;;  %s1418_s13 = sand.u32 1, %s2169_s18  }
 0x488   : > { %s1419_s29 = scalar_lea.sflag [#allocation4], %s1418_s13 }
 0x489   : > { %p1907_p12 = pnand %p1915_p11, %p2254_p6 }
 0x48b   : > { %p1908_p13 = pneg %p1907_p12 }
 0x48d   : > { %2164 = dma.done.wait (%p1908_p13), %s1419_s29, 256  }
 0x48e   : > { %2166 = vsyncadd (%p1908_p13), %s1419_s29, 4294967040  ;;  %s2617_s21 = sld [smem:[#allocation18_spill]]  ;;  %s2620_s18 = smov %s2173_s19 }
 0x48f   : > { %s2618_s23 = sld [smem:[#allocation16_spill]] }
 0x490   : > { %s2619_s20 = sld [smem:[#allocation19_spill]] }
 0x494   : > { %p22_p8 = scmp.ge.s32.totalorder %s2617_s21, 6  }
 0x495   : > { %s2621_s19 = smov %s2618_s23 }
 0x496   :  { %24 = sbr.rel (!%p22_p8) target bundleno = 12 (0xc), region = 117 }
 0x49b   :  { %1425 = vsyncpa [#allocation3], 1 }
 0x49c   :  { %1427 = vsyncpa [#allocation3 + $0x1], 1 }
 0x49d   :  { %1428 = vsyncpa [#allocation6], 1 }
 0x49e   :  { %1430 = vsyncpa [#allocation6 + $0x1], 1 }
 0x49f   :  { %1431 = vsyncpa [#allocation9], 1 }
 0x4a0   :  { %1432 = vsyncpa [#allocation4], 1 }
 0x4a1   :  { %1434 = vsyncpa [#allocation4 + $0x1], 1 }

</bundles_post_ra>
